<compile_context>
chip_gen: v7x
topology: tpu7x:2x2x1
jax: 0.10.0
libtpu: 0.0.40
codegen_flags: <defaults>
</compile_context>

<pallas_src>
import math

import jax
import jax.numpy as jnp
import numpy as np
from jax.experimental import pallas as pl
from jax.experimental.pallas import tpu as pltpu

_LANE = 128     # lane width (last dim)
_SUBLANE = 8    # f32/bf16-safe sublane multiple (second-to-last dim)

# 56 MiB: fits v7x's 64 MiB per-TensorCore VMEM with headroom; also valid on
# v5e/v6e (128 MiB).
_VMEM_CAP_BYTES = 56 << 20
_VMEM_TILE_BUDGET = 48 << 20


def _round_up(x, m):
    return (x + m - 1) // m * m


def _make_ae_kernel(relu_flags):
    """Fused kernel: whole Linear/ReLU chain for one batch tile, in VMEM."""
    n_layers = len(relu_flags)

    def kernel(x_ref, *refs):
        # refs = (w0, b0, w1, b1, ..., w_{L-1}, b_{L-1}, out_ref)
        out_ref = refs[-1]
        params = refs[:-1]
        h = x_ref[...]                              # bf16 activation tile
        for i in range(n_layers):
            w = params[2 * i][...]                  # (d_in_p, d_out_p), bf16
            b = params[2 * i + 1][...]              # (1, d_out_p),      f32
            # bf16 x bf16 matmul on the MXU, f32 accumulation; bias/ReLU in f32.
            acc = jnp.dot(h, w, preferred_element_type=jnp.float32) + b
            if relu_flags[i]:
                acc = jnp.maximum(acc, 0.0)
            if i < n_layers - 1:
                h = acc.astype(jnp.bfloat16)        # bf16 between layers
            else:
                h = acc
        out_ref[...] = h.astype(out_ref.dtype)

    return kernel


def autoencoder_forward(x, weights, biases, relu_flags, *, tile_b=None):
    """
    x:          (B, input_dim)
    weights:    list of (d_in, d_out) arrays  (transposed vs torch Linear)
    biases:     list of (d_out,) or (1, d_out) arrays
    relu_flags: list[bool], whether ReLU follows layer i
    """
    B, D_in = x.shape
    D_out = weights[-1].shape[1]
    assert D_out == D_in, "autoencoder output dim must match input dim"

    # ---- pad feature dims to 128 lanes; weights -> bf16, biases -> f32 ----
    w_pad, b_pad = [], []
    for w, b in zip(weights, biases):
        d_i, d_o = w.shape
        d_ip, d_op = _round_up(d_i, _LANE), _round_up(d_o, _LANE)
        if (d_ip, d_op) == (d_i, d_o):
            wp = w.astype(jnp.bfloat16)
        else:
            wp = jnp.zeros((d_ip, d_op), jnp.bfloat16)
            wp = wp.at[:d_i, :d_o].set(w.astype(jnp.bfloat16))
        b2 = jnp.reshape(b, (1, d_o)).astype(jnp.float32)
        if d_op == d_o:
            bp = b2
        else:
            bp = jnp.zeros((1, d_op), jnp.float32).at[:, :d_o].set(b2)
        w_pad.append(wp)
        b_pad.append(bp)

    D_in_p = w_pad[0].shape[0]
    D_out_p = w_pad[-1].shape[1]
    max_d = max([D_in_p] + [wp.shape[1] for wp in w_pad])
    out_itemsize = jnp.dtype(x.dtype).itemsize

    # ---- batch tiling ----
    b8 = _round_up(B, _SUBLANE)
    if tile_b is None:
        if b8 <= 256:
            tile_b = b8                                   # tiny batch: one tile
        else:
            # target 512-row tiles (multiple of 128) but keep >= 2 grid steps
            tile_b = min(512, max(_round_up(b8 // 2, _LANE), _LANE))
    tile_b = _round_up(min(tile_b, b8), _SUBLANE)

    # per-tile VMEM footprint (resident params counted once + streamed tiles)
    param_bytes = sum(wp.size * 2 + bp.size * 4 for wp, bp in zip(w_pad, b_pad))

    def tile_bytes(tb):
        return (2 * tb * D_in_p * 2            # x tile, bf16, double-buffered
                + 2 * tb * D_out_p * out_itemsize   # out tile, double-buffered
                + 4 * tb * max_d * 4)          # live activation headroom (f32)

    while tile_b > _SUBLANE and param_bytes + tile_bytes(tile_b) > _VMEM_TILE_BUDGET:
        tile_b = max(_SUBLANE, _round_up(tile_b // 2, _SUBLANE))

    B_p = _round_up(b8, tile_b)

    # ---- pad/cast x to bf16 (skip the pad copy when already aligned) ----
    if B_p == B and D_in_p == D_in:
        x_p = x.astype(jnp.bfloat16)
    else:
        x_p = jnp.zeros((B_p, D_in_p), jnp.bfloat16)
        x_p = x_p.at[:B, :D_in].set(x.astype(jnp.bfloat16))

    kernel = _make_ae_kernel(tuple(relu_flags))
    grid = (pl.cdiv(B_p, tile_b),)

    # ---- cost estimate: helps XLA schedule neighbors around the call ----
    flops = 2 * B_p * sum(wp.shape[0] * wp.shape[1] for wp in w_pad)
    bytes_accessed = x_p.size * 2 + param_bytes + B_p * D_out_p * out_itemsize
    cost = pl.CostEstimate(flops=flops, transcendentals=0,
                           bytes_accessed=bytes_accessed)

    # ---- VMEM limit: params (+2x safety margin) + streamed tiles, capped ----
    vmem_limit = int(min(max(2 * param_bytes + tile_bytes(tile_b) + (2 << 20),
                             16 << 20),
                         _VMEM_CAP_BYTES))

    args = [x_p]
    for wp, bp in zip(w_pad, b_pad):
        args.append(wp)
        args.append(bp)

    def _call(use_buffered_params):
        def resident_spec(shape):
            # Constant index_map -> block never changes across grid steps;
            # Buffered(1) avoids pointless double-buffering of the params.
            if use_buffered_params:
                return pl.BlockSpec(shape, lambda i: (0, 0),
                                    pipeline_mode=pl.Buffered(1))
            return pl.BlockSpec(shape, lambda i: (0, 0))

        in_specs = [pl.BlockSpec((tile_b, D_in_p), lambda i: (i, 0))]
        for wp, bp in zip(w_pad, b_pad):
            in_specs.append(resident_spec(wp.shape))
            in_specs.append(resident_spec(bp.shape))
        out_spec = pl.BlockSpec((tile_b, D_out_p), lambda i: (i, 0))

        return pl.pallas_call(
            kernel,
            out_shape=jax.ShapeDtypeStruct((B_p, D_out_p), x.dtype),
            grid=grid,
            in_specs=in_specs,
            out_specs=out_spec,
            compiler_params=pltpu.CompilerParams(
                dimension_semantics=("parallel",),
                vmem_limit_bytes=vmem_limit,
            ),
            cost_estimate=cost,
        )(*args)

    try:
        out_p = _call(True)
    except Exception:
        # Fallback if this runtime rejects Buffered(1) on constant blocks.
        out_p = _call(False)

    if B_p == B and D_out_p == D_out:
        return out_p
    return out_p[:B, :D_out]


def init_autoencoder_params(key, input_dim, encoder_hidden, decoder_hidden=None):
    """Kaiming-normal weights (fan_in, relu gain), zero biases.

    Returns (weights, biases, relu_flags) matching the PyTorch module's layer
    sequence. Weights are (in_dim, out_dim) (transposed vs torch).
    """
    if decoder_hidden is None:
        decoder_hidden = list(reversed(encoder_hidden[:-1]))

    dims, relu_flags = [], []
    prev = input_dim
    for j, h in enumerate(encoder_hidden):
        dims.append((prev, h))
        # ReLU after every encoder linear except the last (bottleneck).
        relu_flags.append(j != len(encoder_hidden) - 1)
        prev = h
    for h in decoder_hidden:
        dims.append((prev, h))
        relu_flags.append(True)        # ReLU after each decoder hidden linear
        prev = h
    dims.append((prev, input_dim))     # final reconstruction layer
    relu_flags.append(False)           # no activation at the output

    weights, biases = [], []
    for (d_in, d_out) in dims:
        key, sub = jax.random.split(key)
        std = math.sqrt(2.0 / d_in)    # kaiming_normal_, mode='fan_in', relu gain
        weights.append(jax.random.normal(sub, (d_in, d_out), jnp.float32) * std)
        biases.append(jnp.zeros((1, d_out), jnp.float32))
    return weights, biases, relu_flags


def reference_forward(x, weights, biases, relu_flags):
    """Pure-JAX reference using the identical bf16-matmul / f32-accumulate /
    bf16-interlayer recipe as the kernel."""
    n = len(weights)
    h = x.astype(jnp.bfloat16)
    for i, (w, b) in enumerate(zip(weights, biases)):
        acc = jnp.dot(h, w.astype(jnp.bfloat16),
                      preferred_element_type=jnp.float32)
        acc = acc + jnp.reshape(b, (1, -1)).astype(jnp.float32)
        if relu_flags[i]:
            acc = jnp.maximum(acc, 0.0)
        h = acc.astype(jnp.bfloat16) if i < n - 1 else acc
    return h.astype(x.dtype)


if __name__ == "__main__":
    # Small shapes consistent with the module:
    #   input_dim=16, encoder_hidden=[32, 8]  ->  bottleneck=8
    #   decoder_hidden defaults to [32]       ->  16 -> 32 -> 8 -> 32 -> 16
    batch = 8
    input_dim = 16
    encoder_hidden = [32, 8]

    key = jax.random.PRNGKey(0)
    key, xkey = jax.random.split(key)
    x = jax.random.normal(xkey, (batch, input_dim), dtype=jnp.float32)

    weights, biases, relu_flags = init_autoencoder_params(
        key, input_dim, encoder_hidden
    )

    out = autoencoder_forward(x, weights, biases, relu_flags)
    out = jax.block_until_ready(out)

    ref = jax.block_until_ready(reference_forward(x, weights, biases, relu_flags))
    np.testing.assert_allclose(np.asarray(out), np.asarray(ref),
                               rtol=1e-2, atol=1e-2)

    print("KERNEL_OK")
</pallas_src>

<mosaic_0001>
module attributes {stable_mosaic.version = 11 : i64} {
  func.func @kernel(%arg0: i32, %arg1: memref<8x128xbf16, #tpu.memory_space<vmem>>, %arg2: memref<128x128xbf16, #tpu.memory_space<vmem>>, %arg3: memref<1x128xf32, #tpu.memory_space<vmem>>, %arg4: memref<128x128xbf16, #tpu.memory_space<vmem>>, %arg5: memref<1x128xf32, #tpu.memory_space<vmem>>, %arg6: memref<128x128xbf16, #tpu.memory_space<vmem>>, %arg7: memref<1x128xf32, #tpu.memory_space<vmem>>, %arg8: memref<128x128xbf16, #tpu.memory_space<vmem>>, %arg9: memref<1x128xf32, #tpu.memory_space<vmem>>, %arg10: memref<8x128xf32, #tpu.memory_space<vmem>>) attributes {dimension_semantics = [#tpu.dimension_semantics<parallel>], iteration_bounds = array<i64: 1>, scalar_prefetch = 0 : i64, scratch_operands = 0 : i64, tpu.core_type = #tpu.core_type<tc>, window_params = [{transform_indices = @transform_0, window_bounds = array<i64: 8, 128>}, {pipeline_mode = #tpu.pipeline_mode<synchronous>, transform_indices = @transform_1, window_bounds = array<i64: 128, 128>}, {pipeline_mode = #tpu.pipeline_mode<synchronous>, transform_indices = @transform_2, window_bounds = array<i64: 1, 128>}, {pipeline_mode = #tpu.pipeline_mode<synchronous>, transform_indices = @transform_3, window_bounds = array<i64: 128, 128>}, {pipeline_mode = #tpu.pipeline_mode<synchronous>, transform_indices = @transform_4, window_bounds = array<i64: 1, 128>}, {pipeline_mode = #tpu.pipeline_mode<synchronous>, transform_indices = @transform_5, window_bounds = array<i64: 128, 128>}, {pipeline_mode = #tpu.pipeline_mode<synchronous>, transform_indices = @transform_6, window_bounds = array<i64: 1, 128>}, {pipeline_mode = #tpu.pipeline_mode<synchronous>, transform_indices = @transform_7, window_bounds = array<i64: 128, 128>}, {pipeline_mode = #tpu.pipeline_mode<synchronous>, transform_indices = @transform_8, window_bounds = array<i64: 1, 128>}, {transform_indices = @transform_9, window_bounds = array<i64: 8, 128>}]} {
    %c0 = arith.constant 0 : index
    %c0_0 = arith.constant 0 : index
    %0 = vector.load %arg1[%c0, %c0_0] : memref<8x128xbf16, #tpu.memory_space<vmem>>, vector<8x128xbf16>
    %c0_1 = arith.constant 0 : index
    %c0_2 = arith.constant 0 : index
    %1 = vector.load %arg2[%c0_1, %c0_2] : memref<128x128xbf16, #tpu.memory_space<vmem>>, vector<128x128xbf16>
    %c0_3 = arith.constant 0 : index
    %c0_4 = arith.constant 0 : index
    %2 = vector.load %arg3[%c0_3, %c0_4] : memref<1x128xf32, #tpu.memory_space<vmem>>, vector<1x128xf32>
    %cst = arith.constant dense<0.000000e+00> : vector<8x128xf32>
    %3 = tpu.matmul %0, %1, %cst {dimension_numbers = #tpu.dot_dimension_numbers<[1], [0], [0], [1], [0, 0, 1, 1], [], []>} : vector<8x128xbf16>, vector<128x128xbf16>, vector<8x128xf32> -> vector<8x128xf32>
    %4 = vector.broadcast %2 : vector<1x128xf32> to vector<8x128xf32>
    %5 = arith.addf %3, %4 : vector<8x128xf32>
    %cst_5 = arith.constant 0.000000e+00 : f32
    %6 = vector.broadcast %cst_5 : f32 to vector<8x128xf32>
    %7 = arith.maximumf %5, %6 : vector<8x128xf32>
    %8 = arith.truncf %7 : vector<8x128xf32> to vector<8x128xbf16>
    %c0_6 = arith.constant 0 : index
    %c0_7 = arith.constant 0 : index
    %9 = vector.load %arg4[%c0_6, %c0_7] : memref<128x128xbf16, #tpu.memory_space<vmem>>, vector<128x128xbf16>
    %c0_8 = arith.constant 0 : index
    %c0_9 = arith.constant 0 : index
    %10 = vector.load %arg5[%c0_8, %c0_9] : memref<1x128xf32, #tpu.memory_space<vmem>>, vector<1x128xf32>
    %cst_10 = arith.constant dense<0.000000e+00> : vector<8x128xf32>
    %11 = tpu.matmul %8, %9, %cst_10 {dimension_numbers = #tpu.dot_dimension_numbers<[1], [0], [0], [1], [0, 0, 1, 1], [], []>} : vector<8x128xbf16>, vector<128x128xbf16>, vector<8x128xf32> -> vector<8x128xf32>
    %12 = vector.broadcast %10 : vector<1x128xf32> to vector<8x128xf32>
    %13 = arith.addf %11, %12 : vector<8x128xf32>
    %14 = arith.truncf %13 : vector<8x128xf32> to vector<8x128xbf16>
    %c0_11 = arith.constant 0 : index
    %c0_12 = arith.constant 0 : index
    %15 = vector.load %arg6[%c0_11, %c0_12] : memref<128x128xbf16, #tpu.memory_space<vmem>>, vector<128x128xbf16>
    %c0_13 = arith.constant 0 : index
    %c0_14 = arith.constant 0 : index
    %16 = vector.load %arg7[%c0_13, %c0_14] : memref<1x128xf32, #tpu.memory_space<vmem>>, vector<1x128xf32>
    %cst_15 = arith.constant dense<0.000000e+00> : vector<8x128xf32>
    %17 = tpu.matmul %14, %15, %cst_15 {dimension_numbers = #tpu.dot_dimension_numbers<[1], [0], [0], [1], [0, 0, 1, 1], [], []>} : vector<8x128xbf16>, vector<128x128xbf16>, vector<8x128xf32> -> vector<8x128xf32>
    %18 = vector.broadcast %16 : vector<1x128xf32> to vector<8x128xf32>
    %19 = arith.addf %17, %18 : vector<8x128xf32>
    %cst_16 = arith.constant 0.000000e+00 : f32
    %20 = vector.broadcast %cst_16 : f32 to vector<8x128xf32>
    %21 = arith.maximumf %19, %20 : vector<8x128xf32>
    %22 = arith.truncf %21 : vector<8x128xf32> to vector<8x128xbf16>
    %c0_17 = arith.constant 0 : index
    %c0_18 = arith.constant 0 : index
    %23 = vector.load %arg8[%c0_17, %c0_18] : memref<128x128xbf16, #tpu.memory_space<vmem>>, vector<128x128xbf16>
    %c0_19 = arith.constant 0 : index
    %c0_20 = arith.constant 0 : index
    %24 = vector.load %arg9[%c0_19, %c0_20] : memref<1x128xf32, #tpu.memory_space<vmem>>, vector<1x128xf32>
    %cst_21 = arith.constant dense<0.000000e+00> : vector<8x128xf32>
    %25 = tpu.matmul %22, %23, %cst_21 {dimension_numbers = #tpu.dot_dimension_numbers<[1], [0], [0], [1], [0, 0, 1, 1], [], []>} : vector<8x128xbf16>, vector<128x128xbf16>, vector<8x128xf32> -> vector<8x128xf32>
    %26 = vector.broadcast %24 : vector<1x128xf32> to vector<8x128xf32>
    %27 = arith.addf %25, %26 : vector<8x128xf32>
    %c0_22 = arith.constant 0 : index
    %c0_23 = arith.constant 0 : index
    %28 = vector.load %arg10[%c0_22, %c0_23] : memref<8x128xf32, #tpu.memory_space<vmem>>, vector<8x128xf32>
    tpu.vector_store %arg10[%c0_22, %c0_23], %27 {strides = array<i32>} : memref<8x128xf32, #tpu.memory_space<vmem>>, vector<8x128xf32>,
    return
  }
  func.func @transform_0(%arg0: i32) -> (i32, i32) {
    %c0_i32 = arith.constant 0 : i32
    %c0_i32_0 = arith.constant 0 : i32
    return %arg0, %c0_i32 : i32, i32
  }
  func.func @transform_1(%arg0: i32) -> (i32, i32) {
    %c0_i32 = arith.constant 0 : i32
    %c0_i32_0 = arith.constant 0 : i32
    %c0_i32_1 = arith.constant 0 : i32
    return %c0_i32, %c0_i32_0 : i32, i32
  }
  func.func @transform_2(%arg0: i32) -> (i32, i32) {
    %c0_i32 = arith.constant 0 : i32
    %c0_i32_0 = arith.constant 0 : i32
    %c0_i32_1 = arith.constant 0 : i32
    return %c0_i32, %c0_i32_0 : i32, i32
  }
  func.func @transform_3(%arg0: i32) -> (i32, i32) {
    %c0_i32 = arith.constant 0 : i32
    %c0_i32_0 = arith.constant 0 : i32
    %c0_i32_1 = arith.constant 0 : i32
    return %c0_i32, %c0_i32_0 : i32, i32
  }
  func.func @transform_4(%arg0: i32) -> (i32, i32) {
    %c0_i32 = arith.constant 0 : i32
    %c0_i32_0 = arith.constant 0 : i32
    %c0_i32_1 = arith.constant 0 : i32
    return %c0_i32, %c0_i32_0 : i32, i32
  }
  func.func @transform_5(%arg0: i32) -> (i32, i32) {
    %c0_i32 = arith.constant 0 : i32
    %c0_i32_0 = arith.constant 0 : i32
    %c0_i32_1 = arith.constant 0 : i32
    return %c0_i32, %c0_i32_0 : i32, i32
  }
  func.func @transform_6(%arg0: i32) -> (i32, i32) {
    %c0_i32 = arith.constant 0 : i32
    %c0_i32_0 = arith.constant 0 : i32
    %c0_i32_1 = arith.constant 0 : i32
    return %c0_i32, %c0_i32_0 : i32, i32
  }
  func.func @transform_7(%arg0: i32) -> (i32, i32) {
    %c0_i32 = arith.constant 0 : i32
    %c0_i32_0 = arith.constant 0 : i32
    %c0_i32_1 = arith.constant 0 : i32
    return %c0_i32, %c0_i32_0 : i32, i32
  }
  func.func @transform_8(%arg0: i32) -> (i32, i32) {
    %c0_i32 = arith.constant 0 : i32
    %c0_i32_0 = arith.constant 0 : i32
    %c0_i32_1 = arith.constant 0 : i32
    return %c0_i32, %c0_i32_0 : i32, i32
  }
  func.func @transform_9(%arg0: i32) -> (i32, i32) {
    %c0_i32 = arith.constant 0 : i32
    %c0_i32_0 = arith.constant 0 : i32
    return %arg0, %c0_i32 : i32, i32
  }
}

module attributes {stable_mosaic.version = 11 : i64} {
  func.func @kernel(%arg0: i32, %arg1: memref<8x128xbf16, #tpu.memory_space<vmem>>, %arg2: memref<128x128xbf16, #tpu.memory_space<vmem>>, %arg3: memref<1x128xf32, #tpu.memory_space<vmem>>, %arg4: memref<128x128xbf16, #tpu.memory_space<vmem>>, %arg5: memref<1x128xf32, #tpu.memory_space<vmem>>, %arg6: memref<128x128xbf16, #tpu.memory_space<vmem>>, %arg7: memref<1x128xf32, #tpu.memory_space<vmem>>, %arg8: memref<128x128xbf16, #tpu.memory_space<vmem>>, %arg9: memref<1x128xf32, #tpu.memory_space<vmem>>, %arg10: memref<8x128xf32, #tpu.memory_space<vmem>>) attributes {dimension_semantics = [#tpu.dimension_semantics<parallel>], iteration_bounds = array<i64: 1>, scalar_prefetch = 0 : i64, scratch_operands = 0 : i64, tpu.core_type = #tpu.core_type<tc>, window_params = [{transform_indices = @transform_0, window_bounds = array<i64: 8, 128>}, {pipeline_mode = #tpu.pipeline_mode<synchronous>, transform_indices = @transform_1, window_bounds = array<i64: 128, 128>}, {pipeline_mode = #tpu.pipeline_mode<synchronous>, transform_indices = @transform_2, window_bounds = array<i64: 1, 128>}, {pipeline_mode = #tpu.pipeline_mode<synchronous>, transform_indices = @transform_3, window_bounds = array<i64: 128, 128>}, {pipeline_mode = #tpu.pipeline_mode<synchronous>, transform_indices = @transform_4, window_bounds = array<i64: 1, 128>}, {pipeline_mode = #tpu.pipeline_mode<synchronous>, transform_indices = @transform_5, window_bounds = array<i64: 128, 128>}, {pipeline_mode = #tpu.pipeline_mode<synchronous>, transform_indices = @transform_6, window_bounds = array<i64: 1, 128>}, {pipeline_mode = #tpu.pipeline_mode<synchronous>, transform_indices = @transform_7, window_bounds = array<i64: 128, 128>}, {pipeline_mode = #tpu.pipeline_mode<synchronous>, transform_indices = @transform_8, window_bounds = array<i64: 1, 128>}, {transform_indices = @transform_9, window_bounds = array<i64: 8, 128>}]} {
    %c0 = arith.constant 0 : index
    %c0_0 = arith.constant 0 : index
    %0 = vector.load %arg1[%c0, %c0_0] : memref<8x128xbf16, #tpu.memory_space<vmem>>, vector<8x128xbf16>
    %c0_1 = arith.constant 0 : index
    %c0_2 = arith.constant 0 : index
    %1 = vector.load %arg2[%c0_1, %c0_2] : memref<128x128xbf16, #tpu.memory_space<vmem>>, vector<128x128xbf16>
    %c0_3 = arith.constant 0 : index
    %c0_4 = arith.constant 0 : index
    %2 = vector.load %arg3[%c0_3, %c0_4] : memref<1x128xf32, #tpu.memory_space<vmem>>, vector<1x128xf32>
    %cst = arith.constant dense<0.000000e+00> : vector<8x128xf32>
    %3 = tpu.matmul %0, %1, %cst {dimension_numbers = #tpu.dot_dimension_numbers<[1], [0], [0], [1], [0, 0, 1, 1], [], []>} : vector<8x128xbf16>, vector<128x128xbf16>, vector<8x128xf32> -> vector<8x128xf32>
    %4 = vector.broadcast %2 : vector<1x128xf32> to vector<8x128xf32>
    %5 = arith.addf %3, %4 : vector<8x128xf32>
    %cst_5 = arith.constant 0.000000e+00 : f32
    %6 = vector.broadcast %cst_5 : f32 to vector<8x128xf32>
    %7 = arith.maximumf %5, %6 : vector<8x128xf32>
    %8 = arith.truncf %7 : vector<8x128xf32> to vector<8x128xbf16>
    %c0_6 = arith.constant 0 : index
    %c0_7 = arith.constant 0 : index
    %9 = vector.load %arg4[%c0_6, %c0_7] : memref<128x128xbf16, #tpu.memory_space<vmem>>, vector<128x128xbf16>
    %c0_8 = arith.constant 0 : index
    %c0_9 = arith.constant 0 : index
    %10 = vector.load %arg5[%c0_8, %c0_9] : memref<1x128xf32, #tpu.memory_space<vmem>>, vector<1x128xf32>
    %cst_10 = arith.constant dense<0.000000e+00> : vector<8x128xf32>
    %11 = tpu.matmul %8, %9, %cst_10 {dimension_numbers = #tpu.dot_dimension_numbers<[1], [0], [0], [1], [0, 0, 1, 1], [], []>} : vector<8x128xbf16>, vector<128x128xbf16>, vector<8x128xf32> -> vector<8x128xf32>
    %12 = vector.broadcast %10 : vector<1x128xf32> to vector<8x128xf32>
    %13 = arith.addf %11, %12 : vector<8x128xf32>
    %14 = arith.truncf %13 : vector<8x128xf32> to vector<8x128xbf16>
    %c0_11 = arith.constant 0 : index
    %c0_12 = arith.constant 0 : index
    %15 = vector.load %arg6[%c0_11, %c0_12] : memref<128x128xbf16, #tpu.memory_space<vmem>>, vector<128x128xbf16>
    %c0_13 = arith.constant 0 : index
    %c0_14 = arith.constant 0 : index
    %16 = vector.load %arg7[%c0_13, %c0_14] : memref<1x128xf32, #tpu.memory_space<vmem>>, vector<1x128xf32>
    %cst_15 = arith.constant dense<0.000000e+00> : vector<8x128xf32>
    %17 = tpu.matmul %14, %15, %cst_15 {dimension_numbers = #tpu.dot_dimension_numbers<[1], [0], [0], [1], [0, 0, 1, 1], [], []>} : vector<8x128xbf16>, vector<128x128xbf16>, vector<8x128xf32> -> vector<8x128xf32>
    %18 = vector.broadcast %16 : vector<1x128xf32> to vector<8x128xf32>
    %19 = arith.addf %17, %18 : vector<8x128xf32>
    %cst_16 = arith.constant 0.000000e+00 : f32
    %20 = vector.broadcast %cst_16 : f32 to vector<8x128xf32>
    %21 = arith.maximumf %19, %20 : vector<8x128xf32>
    %22 = arith.truncf %21 : vector<8x128xf32> to vector<8x128xbf16>
    %c0_17 = arith.constant 0 : index
    %c0_18 = arith.constant 0 : index
    %23 = vector.load %arg8[%c0_17, %c0_18] : memref<128x128xbf16, #tpu.memory_space<vmem>>, vector<128x128xbf16>
    %c0_19 = arith.constant 0 : index
    %c0_20 = arith.constant 0 : index
    %24 = vector.load %arg9[%c0_19, %c0_20] : memref<1x128xf32, #tpu.memory_space<vmem>>, vector<1x128xf32>
    %cst_21 = arith.constant dense<0.000000e+00> : vector<8x128xf32>
    %25 = tpu.matmul %22, %23, %cst_21 {dimension_numbers = #tpu.dot_dimension_numbers<[1], [0], [0], [1], [0, 0, 1, 1], [], []>} : vector<8x128xbf16>, vector<128x128xbf16>, vector<8x128xf32> -> vector<8x128xf32>
    %26 = vector.broadcast %24 : vector<1x128xf32> to vector<8x128xf32>
    %27 = arith.addf %25, %26 : vector<8x128xf32>
    %c0_22 = arith.constant 0 : index
    %c0_23 = arith.constant 0 : index
    %28 = vector.load %arg10[%c0_22, %c0_23] : memref<8x128xf32, #tpu.memory_space<vmem>>, vector<8x128xf32>
    tpu.vector_store %arg10[%c0_22, %c0_23], %27 {strides = array<i32>} : memref<8x128xf32, #tpu.memory_space<vmem>>, vector<8x128xf32>,
    return
  }
  func.func @transform_0(%arg0: i32) -> (i32, i32) {
    %c0_i32 = arith.constant 0 : i32
    %c0_i32_0 = arith.constant 0 : i32
    return %arg0, %c0_i32 : i32, i32
  }
  func.func @transform_1(%arg0: i32) -> (i32, i32) {
    %c0_i32 = arith.constant 0 : i32
    %c0_i32_0 = arith.constant 0 : i32
    %c0_i32_1 = arith.constant 0 : i32
    return %c0_i32, %c0_i32_0 : i32, i32
  }
  func.func @transform_2(%arg0: i32) -> (i32, i32) {
    %c0_i32 = arith.constant 0 : i32
    %c0_i32_0 = arith.constant 0 : i32
    %c0_i32_1 = arith.constant 0 : i32
    return %c0_i32, %c0_i32_0 : i32, i32
  }
  func.func @transform_3(%arg0: i32) -> (i32, i32) {
    %c0_i32 = arith.constant 0 : i32
    %c0_i32_0 = arith.constant 0 : i32
    %c0_i32_1 = arith.constant 0 : i32
    return %c0_i32, %c0_i32_0 : i32, i32
  }
  func.func @transform_4(%arg0: i32) -> (i32, i32) {
    %c0_i32 = arith.constant 0 : i32
    %c0_i32_0 = arith.constant 0 : i32
    %c0_i32_1 = arith.constant 0 : i32
    return %c0_i32, %c0_i32_0 : i32, i32
  }
  func.func @transform_5(%arg0: i32) -> (i32, i32) {
    %c0_i32 = arith.constant 0 : i32
    %c0_i32_0 = arith.constant 0 : i32
    %c0_i32_1 = arith.constant 0 : i32
    return %c0_i32, %c0_i32_0 : i32, i32
  }
  func.func @transform_6(%arg0: i32) -> (i32, i32) {
    %c0_i32 = arith.constant 0 : i32
    %c0_i32_0 = arith.constant 0 : i32
    %c0_i32_1 = arith.constant 0 : i32
    return %c0_i32, %c0_i32_0 : i32, i32
  }
  func.func @transform_7(%arg0: i32) -> (i32, i32) {
    %c0_i32 = arith.constant 0 : i32
    %c0_i32_0 = arith.constant 0 : i32
    %c0_i32_1 = arith.constant 0 : i32
    return %c0_i32, %c0_i32_0 : i32, i32
  }
  func.func @transform_8(%arg0: i32) -> (i32, i32) {
    %c0_i32 = arith.constant 0 : i32
    %c0_i32_0 = arith.constant 0 : i32
    %c0_i32_1 = arith.constant 0 : i32
    return %c0_i32, %c0_i32_0 : i32, i32
  }
  func.func @transform_9(%arg0: i32) -> (i32, i32) {
    %c0_i32 = arith.constant 0 : i32
    %c0_i32_0 = arith.constant 0 : i32
    return %arg0, %c0_i32 : i32, i32
  }
}

</mosaic_0001>

<bundles_post_ra>
// kernel: tpu_custom_call.1
= control target key start
LH: loop header
LB: loop body
LE: loop exit
PB: predicated region body
PF: predicated region fallthrough
CT: control target
= control target key end

     0   :  { %14 = vsyncpa [#allocation3], 0  ;;  %s1098_s0 = inlined_call_operand.hbm [shape: bf16[8,128], index: 0, kind: input, shape index: {}]   ;;  %s1099_s1 = inlined_call_operand.hbm [shape: bf16[128,128], index: 1, kind: input, shape index: {}]   ;;  %s1100_s2 = inlined_call_operand.vmem [shape: f32[1,128], index: 2, kind: input, shape index: {}]   ;;  %s1101_s3 = inlined_call_operand.hbm [shape: bf16[128,128], index: 3, kind: input, shape index: {}]   ;;  %s1102_s4 = inlined_call_operand.vmem [shape: f32[1,128], index: 4, kind: input, shape index: {}]   ;;  %s1103_s5 = inlined_call_operand.hbm [shape: bf16[128,128], index: 5, kind: input, shape index: {}]   ;;  %s1104_s6 = inlined_call_operand.vmem [shape: f32[1,128], index: 6, kind: input, shape index: {}]   ;;  %s1105_s7 = inlined_call_operand.hbm [shape: bf16[128,128], index: 7, kind: input, shape index: {}]   ;;  %s1106_s8 = inlined_call_operand.vmem [shape: f32[1,128], index: 8, kind: input, shape index: {}]   ;;  %s1107_s9 = inlined_call_operand.hbm [shape: f32[8,128], index: 9, kind: output, shape index: {}]  }
   0x1   :  { %15 = vsyncpa [#allocation6], 0 }
   0x2   :  { %16 = vsyncpa [#allocation9], 0 }
   0x3   :  { %17 = vsyncpa [#allocation4], 0  ;;  %s902_s30 = smov [#allocation5]   ;;  %s762_s13 = scalar_lea.hbm %s1099_s1, 1024 }
   0x4   :  { %s33_s10 = sshll.u32 %s902_s30, 4  ;;  %p763_p0 = scmp.ne.s32.totalorder %s1099_s1, %s762_s13  ;;  %s34_s10 = int_to_ptr.vmem [resolvable:$true] %s33_s10 }
   0x5   :  { %p766_p1 = scmp.lt.u32.totalorder %s762_s13, %s1099_s1 }
   0x7   :  { %p768_p2 = pnand %p766_p1, %p763_p0 }
   0x9   :  { %771 = shalt.err (!%p768_p2)
}
   0xa   :  { %s772_s18 = scalar_lea.vmem %s34_s10, 1024  ;;  %p777_p4 = scmp.lt.s32.totalorder %s34_s10, %s34_s10 }
   0xb   :  { %p773_p3 = scmp.ne.s32.totalorder %s34_s10, %s772_s18  ;;  %p778_p5 = scmp.lt.s32.totalorder %s772_s18, %s772_s18 }
   0xd   :  { %p779_p6 = por %p778_p5, %p777_p4 }
   0xf   :  { %p780_p7 = pnand %p779_p6, %p773_p3 }
  0x11   :  { %783 = shalt.err (!%p780_p7)
}
  0x12   :  { %s903_s19 = smov 64   ;;  %s904_s20 = smov 4  }
  0x13   :  { %39 = dma.hbm_to_vmem [thread:$0]  %s1099_s1, 1024, %s34_s10, [#allocation6], %s903_s19, %s903_s19, %s904_s20  }
  0x14   :  { %s905_s23 = smov [#allocation8]   ;;  %s906_s25 = smov [#allocation2]  }
  0x15   :  { %s61_s24 = sshll.u32 %s905_s23, 4  ;;  %s24_s26 = sshll.u32 %s906_s25, 4  ;;  %s62_s24 = int_to_ptr.vmem [resolvable:$true] %s61_s24  ;;  %s25_s26 = int_to_ptr.vmem [resolvable:$true] %s24_s26 }
  0x16   :  { %s784_s29 = scalar_lea.hbm %s1103_s5, 1024 }
  0x17   :  { %p785_p8 = scmp.ne.s32.totalorder %s1103_s5, %s784_s29  ;;  %p788_p9 = scmp.lt.u32.totalorder %s784_s29, %s1103_s5 }
  0x19   :  { %p790_p10 = pnand %p788_p9, %p785_p8 }
  0x1b   :  { %793 = shalt.err (!%p790_p10)
}
  0x1c   :  { %s794_s1 = scalar_lea.vmem %s62_s24, 1024  ;;  %p799_p12 = scmp.lt.s32.totalorder %s62_s24, %s62_s24 }
  0x1d   :  { %p795_p11 = scmp.ne.s32.totalorder %s62_s24, %s794_s1  ;;  %p800_p13 = scmp.lt.s32.totalorder %s794_s1, %s794_s1 }
  0x1f   :  { %p801_p0 = por %p800_p13, %p799_p12 }
  0x21   :  { %p802_p1 = pnand %p801_p0, %p795_p11 }
  0x23   :  { %805 = shalt.err (!%p802_p1)
}
  0x24   :  { %67 = dma.hbm_to_vmem [thread:$0]  %s1103_s5, 1024, %s62_s24, [#allocation9], %s903_s19, %s903_s19, %s904_s20  }
  0x25   :  { %s806_s17 = scalar_lea.hbm %s1098_s0, 64 }
  0x26   :  { %p807_p2 = scmp.ne.s32.totalorder %s1098_s0, %s806_s17  ;;  %p810_p3 = scmp.lt.u32.totalorder %s806_s17, %s1098_s0 }
  0x28   :  { %p812_p4 = pnand %p810_p3, %p807_p2 }
  0x2a   :  { %815 = shalt.err (!%p812_p4)
}
  0x2b   :  { %s816_s25 = scalar_lea.vmem %s25_s26, 64  ;;  %p821_p6 = scmp.lt.s32.totalorder %s25_s26, %s25_s26 }
  0x2c   :  { %p817_p5 = scmp.ne.s32.totalorder %s25_s26, %s816_s25  ;;  %p822_p7 = scmp.lt.s32.totalorder %s816_s25, %s816_s25 }
  0x2e   :  { %p823_p8 = por %p822_p7, %p821_p6 }
  0x30   :  { %p824_p9 = pnand %p823_p8, %p817_p5 }
  0x32   :  { %827 = shalt.err (!%p824_p9)
}
  0x33   :  { %27 = dma.hbm_to_vmem [thread:$0]  %s1098_s0, 64, %s25_s26, [#allocation3]  }
  0x34   :  { %s907_s27 = smov [#allocation7]   ;;  %s908_s29 = smov [#allocation10]  }
  0x35   :  { %s47_s28 = sshll.u32 %s907_s27, 4  ;;  %s75_s30 = sshll.u32 %s908_s29, 4  ;;  %s48_s28 = int_to_ptr.vmem [resolvable:$true] %s47_s28  ;;  %s76_s30 = int_to_ptr.vmem [resolvable:$true] %s75_s30 }
  0x36   :  { %s828_s13 = scalar_lea.hbm %s1101_s3, 1024 }
  0x37   :  { %p829_p10 = scmp.ne.s32.totalorder %s1101_s3, %s828_s13  ;;  %p832_p11 = scmp.lt.u32.totalorder %s828_s13, %s1101_s3 }
  0x39   :  { %p834_p12 = pnand %p832_p11, %p829_p10 }
  0x3b   :  { %837 = shalt.err (!%p834_p12)
}
  0x3c   :  { %s838_s0 = scalar_lea.vmem %s48_s28, 1024  ;;  %p843_p0 = scmp.lt.s32.totalorder %s48_s28, %s48_s28 }
  0x3d   :  { %p839_p13 = scmp.ne.s32.totalorder %s48_s28, %s838_s0  ;;  %p844_p1 = scmp.lt.s32.totalorder %s838_s0, %s838_s0 }
  0x3f   :  { %p845_p2 = por %p844_p1, %p843_p0 }
  0x41   :  { %p846_p3 = pnand %p845_p2, %p839_p13 }
  0x43   :  { %849 = shalt.err (!%p846_p3)
}
  0x44   :  { %53 = dma.hbm_to_vmem [thread:$0]  %s1101_s3, 1024, %s48_s28, [#allocation6], %s903_s19, %s903_s19, %s904_s20  }
  0x45   :  { %s850_s21 = scalar_lea.hbm %s1105_s7, 1024 }
  0x46   :  { %p851_p4 = scmp.ne.s32.totalorder %s1105_s7, %s850_s21  ;;  %p854_p5 = scmp.lt.u32.totalorder %s850_s21, %s1105_s7 }
  0x48   :  { %p856_p6 = pnand %p854_p5, %p851_p4 }
  0x4a   :  { %859 = shalt.err (!%p856_p6)
}
  0x4b   :  { %s860_s24 = scalar_lea.vmem %s76_s30, 1024  ;;  %p865_p8 = scmp.lt.s32.totalorder %s76_s30, %s76_s30 }
  0x4c   :  { %p861_p7 = scmp.ne.s32.totalorder %s76_s30, %s860_s24  ;;  %p866_p9 = scmp.lt.s32.totalorder %s860_s24, %s860_s24 }
  0x4e   :  { %p867_p10 = por %p866_p9, %p865_p8 }
  0x50   :  { %p868_p11 = pnand %p867_p10, %p861_p7 }
  0x52   :  { %871 = shalt.err (!%p868_p11)
}
  0x53   :  { %81 = dma.hbm_to_vmem [thread:$0]  %s1105_s7, 1024, %s76_s30, [#allocation9], %s903_s19, %s903_s19, %s904_s20  }
  0x54   :  { %894 = dma.done.wait [#allocation3], 64  }
  0x55   :  { %895 = vsyncadd [#allocation3], 4294967232 }
  0x56   :  { %896 = dma.done.wait [#allocation6], 2048  }
  0x57   :  { %897 = vsyncadd [#allocation6], 4294965248 }
  0x58   :  { %898 = dma.done.wait [#allocation9], 2048  }
  0x59   :  { %899 = vsyncadd [#allocation9], 4294965248  ;;  %v909_v0 = vmov 0.0   ;;  %vm910_vm0 = vmmov 0   ;;  %v730_v1 = vld [vmem:[#allocation5] sm:$0xff]   ;;  %v731_v2 = vld [vmem:[#allocation5 + $0x8] sm:$0xff]  }
  0x5a   :  { %640 = vmatprep.subr.bf16.mxu0 %v909_v0  ;;  %656 = vmatprep.mubr.msk.bf16.mxu0 %vm910_vm0, %v909_v0  ;;  %v732_v3 = vld [vmem:[#allocation5 + $0x10] sm:$0xff]   ;;  %v738_v4 = vld [vmem:[#allocation7] sm:$0xff]   ;;  %v733_v5 = vld [vmem:[#allocation5 + $0x18] sm:$0xff]   ;;  %s911_s11 = smov [#allocation11]  }
  0x5b   :  { %660 = vmatprep.subr.bf16.mxu1 %v909_v0  ;;  %676 = vmatprep.mubr.msk.bf16.mxu1 %vm910_vm0, %v909_v0  ;;  %v739_v6 = vld [vmem:[#allocation7 + $0x8] sm:$0xff]   ;;  %v734_v7 = vld [vmem:[#allocation5 + $0x20] sm:$0xff]   ;;  %v740_v8 = vld [vmem:[#allocation7 + $0x10] sm:$0xff]   ;;  %s557_s12 = sshll.u32 %s911_s11, 4  ;;  %s558_s12 = int_to_ptr.vmem [resolvable:$true] %s557_s12 }
  0x5c   :  { %641 = vmatpush3.bf16.msra.mxu0 %v730_v1  ;;  %661 = vmatpush3.bf16.msra.mxu1 %v738_v4  ;;  %v735_v9 = vld [vmem:[#allocation5 + $0x28] sm:$0xff]   ;;  %v741_v10 = vld [vmem:[#allocation7 + $0x18] sm:$0xff]   ;;  %v736_v11 = vld [vmem:[#allocation5 + $0x30] sm:$0xff]   ;;  %p877_p13 = scmp.lt.s32.totalorder %s558_s12, %s558_s12 }
  0x5d   :  { %642 = vmatprep.subr.bf16.mxu0 %v909_v0  ;;  %662 = vmatprep.subr.bf16.mxu1 %v909_v0  ;;  %v742_v12 = vld [vmem:[#allocation7 + $0x20] sm:$0xff]   ;;  %v737_v13 = vld [vmem:[#allocation5 + $0x38] sm:$0xff]   ;;  %v743_v14 = vld [vmem:[#allocation7 + $0x28] sm:$0xff]  }
  0x5e   :  { %v100_v15 = vld [vmem:[#allocation2] sm:$0xf]  ;;  %v744_v16 = vld [vmem:[#allocation7 + $0x30] sm:$0xff]   ;;  %v746_v18 = vld [vmem:[#allocation8] sm:$0xff]  }
  0x5f   :  { %v745_v17 = vld [vmem:[#allocation7 + $0x38] sm:$0xff]   ;;  %v747_v19 = vld [vmem:[#allocation8 + $0x8] sm:$0xff]   ;;  %v748_v20 = vld [vmem:[#allocation8 + $0x10] sm:$0xff]  }
  0x60   :  { %643 = vmatpush3.bf16.msra.mxu0 %v731_v2  ;;  %663 = vmatpush3.bf16.msra.mxu1 %v739_v6  ;;  %v749_v21 = vld [vmem:[#allocation8 + $0x18] sm:$0xff]   ;;  %v750_v22 = vld [vmem:[#allocation8 + $0x20] sm:$0xff]   ;;  %v751_v23 = vld [vmem:[#allocation8 + $0x28] sm:$0xff]  }
  0x61   :  { %644 = vmatprep.subr.bf16.mxu0 %v909_v0  ;;  %664 = vmatprep.subr.bf16.mxu1 %v909_v0  ;;  %v752_v24 = vld [vmem:[#allocation8 + $0x30] sm:$0xff]   ;;  %v568_v25 = vld [vmem:[%s1100_s2] ss:$0 sm:$0xff]  ;;  %v754_v34 = vld [vmem:[#allocation10] sm:$0xff]  }
  0x62   :  { %v753_v33 = vld [vmem:[#allocation8 + $0x38] sm:$0xff]   ;;  %v755_v35 = vld [vmem:[#allocation10 + $0x8] sm:$0xff]   ;;  %v756_v36 = vld [vmem:[#allocation10 + $0x10] sm:$0xff]  }
  0x63   :  { %v757_v37 = vld [vmem:[#allocation10 + $0x18] sm:$0xff]   ;;  %v758_v38 = vld [vmem:[#allocation10 + $0x20] sm:$0xff]   ;;  %v759_v39 = vld [vmem:[#allocation10 + $0x28] sm:$0xff]  }
  0x64   :  { %645 = vmatpush3.bf16.msra.mxu0 %v732_v3  ;;  %665 = vmatpush3.bf16.msra.mxu1 %v740_v8  ;;  %v577_v40 = vld [vmem:[%s1102_s4] ss:$0 sm:$0xff]  ;;  %v760_v47 = vld [vmem:[#allocation10 + $0x30] sm:$0xff]  }
  0x65   :  { %646 = vmatprep.subr.bf16.mxu0 %v909_v0  ;;  %666 = vmatprep.subr.bf16.mxu1 %v909_v0  ;;  %v761_v48 = vld [vmem:[#allocation10 + $0x38] sm:$0xff]  }
  0x66   :  { %v586_v49 = vld [vmem:[%s1104_s6] ss:$0 sm:$0xff]  ;;  %s872_s6 = scalar_lea.vmem %s558_s12, 128 }
  0x67   :  { %v595_v57 = vld [vmem:[%s1106_s8] ss:$0 sm:$0xff]  ;;  %p873_p12 = scmp.ne.s32.totalorder %s558_s12, %s872_s6  ;;  %p878_p0 = scmp.lt.s32.totalorder %s872_s6, %s872_s6 }
  0x68   :  { %647 = vmatpush3.bf16.msra.mxu0 %v733_v5  ;;  %667 = vmatpush3.bf16.msra.mxu1 %v741_v10 }
  0x69   :  { %648 = vmatprep.subr.bf16.mxu0 %v909_v0  ;;  %668 = vmatprep.subr.bf16.mxu1 %v909_v0  ;;  %p879_p1 = por %p878_p0, %p877_p13 }
  0x6b   :  { %p880_p2 = pnand %p879_p1, %p873_p12 }
  0x6c   :  { %649 = vmatpush3.bf16.msra.mxu0 %v734_v7  ;;  %669 = vmatpush3.bf16.msra.mxu1 %v742_v12 }
  0x6d   :  { %650 = vmatprep.subr.bf16.mxu0 %v909_v0  ;;  %670 = vmatprep.subr.bf16.mxu1 %v909_v0 }
  0x70   :  { %651 = vmatpush3.bf16.msra.mxu0 %v735_v9  ;;  %671 = vmatpush3.bf16.msra.mxu1 %v743_v14 }
  0x71   :  { %652 = vmatprep.subr.bf16.mxu0 %v909_v0  ;;  %672 = vmatprep.subr.bf16.mxu1 %v909_v0 }
  0x74   :  { %653 = vmatpush3.bf16.msra.mxu0 %v736_v11  ;;  %673 = vmatpush3.bf16.msra.mxu1 %v744_v16 }
  0x75   :  { %654 = vmatprep.subr.bf16.mxu0 %v909_v0  ;;  %674 = vmatprep.subr.bf16.mxu1 %v909_v0 }
  0x78   :  { %655 = vmatpush3.bf16.msra.mxu0 %v737_v13  ;;  %675 = vmatpush3.bf16.msra.mxu1 %v745_v17 }
  0x79   :  { %680 = vmatprep.subr.bf16.mxu0 %v909_v0  ;;  %700 = vmatprep.subr.bf16.mxu1 %v909_v0 }
  0x7b   :  { %657 = vmatmul.mubr.bf16.vlgmr.msra.gmra.mrb[0].mxu0 %v100_v15 }
  0x7c   :  { %696 = vmatprep.mubr.msk.bf16.mxu0 %vm910_vm0, %v909_v0  ;;  %681 = vmatpush3.bf16.msra.mxu0 %v746_v18 }
  0x7d   :  { %682 = vmatprep.subr.bf16.mxu0 %v909_v0 }
  0x80   :  { %683 = vmatpush3.bf16.msra.mxu0 %v747_v19 }
  0x81   :  { %684 = vmatprep.subr.bf16.mxu0 %v909_v0 }
  0x84   :  { %685 = vmatpush3.bf16.msra.mxu0 %v748_v20 }
  0x85   :  { %686 = vmatprep.subr.bf16.mxu0 %v909_v0 }
  0x88   :  { %687 = vmatpush3.bf16.msra.mxu0 %v749_v21 }
  0x89   :  { %688 = vmatprep.subr.bf16.mxu0 %v909_v0 }
  0x8c   :  { %689 = vmatpush3.bf16.msra.mxu0 %v750_v22 }
  0x8d   :  { %690 = vmatprep.subr.bf16.mxu0 %v909_v0 }
  0x90   :  { %691 = vmatpush3.bf16.msra.mxu0 %v751_v23 }
  0x91   :  { %692 = vmatprep.subr.bf16.mxu0 %v909_v0 }
  0x94   :  { %693 = vmatpush3.bf16.msra.mxu0 %v752_v24 }
  0x95   :  { %694 = vmatprep.subr.bf16.mxu0 %v909_v0 }
  0x98   :  { %695 = vmatpush3.bf16.msra.mxu0 %v753_v33 }
 0x14e   :  { %v206_v26 = vpop.f32.mrb[0].mxu0 }
 0x14f   :  { %v207_v27 = vadd.f32 %v568_v25, %v206_v26  ;;  %v658_v28 = vpop.f32.mrb[1].mxu0 }
 0x150   :  { %v209_v29 = vpop.f32.mrb[2].mxu0 }
 0x151   :  { %v212_v30 = vmax.f32 %v207_v27, 0.0  ;;  %v659_v31 = vpop.f32.mrb[3].mxu0 }
 0x153   :  { %v213_v32 = vpack.c.bf16 %v212_v30, %v212_v30 }
 0x155   :  { %677 = vmatmul.mubr.bf16.vlgmr.msra.gmra.mrb[0].mxu1 %v213_v32 }
 0x156   :  { %716 = vmatprep.mubr.msk.bf16.mxu1 %vm910_vm0, %v909_v0  ;;  %701 = vmatpush3.bf16.msra.mxu1 %v754_v34 }
 0x157   :  { %702 = vmatprep.subr.bf16.mxu1 %v909_v0 }
 0x15a   :  { %703 = vmatpush3.bf16.msra.mxu1 %v755_v35 }
 0x15b   :  { %704 = vmatprep.subr.bf16.mxu1 %v909_v0 }
 0x15e   :  { %705 = vmatpush3.bf16.msra.mxu1 %v756_v36 }
 0x15f   :  { %706 = vmatprep.subr.bf16.mxu1 %v909_v0 }
 0x162   :  { %707 = vmatpush3.bf16.msra.mxu1 %v757_v37 }
 0x163   :  { %708 = vmatprep.subr.bf16.mxu1 %v909_v0 }
 0x166   :  { %709 = vmatpush3.bf16.msra.mxu1 %v758_v38 }
 0x167   :  { %710 = vmatprep.subr.bf16.mxu1 %v909_v0 }
 0x16a   :  { %711 = vmatpush3.bf16.msra.mxu1 %v759_v39 }
 0x16b   :  { %712 = vmatprep.subr.bf16.mxu1 %v909_v0 }
 0x16e   :  { %713 = vmatpush3.bf16.msra.mxu1 %v760_v47 }
 0x16f   :  { %714 = vmatprep.subr.bf16.mxu1 %v909_v0 }
 0x172   :  { %715 = vmatpush3.bf16.msra.mxu1 %v761_v48 }
 0x228   :  { %v319_v41 = vpop.f32.mrb[0].mxu1 }
 0x229   :  { %v320_v42 = vadd.f32 %v577_v40, %v319_v41  ;;  %v678_v43 = vpop.f32.mrb[1].mxu1 }
 0x22a   :  { %v322_v44 = vpop.f32.mrb[2].mxu1 }
 0x22b   :  { %v325_v45 = vpack.c.bf16 %v320_v42, %v320_v42  ;;  %v679_v46 = vpop.f32.mrb[3].mxu1 }
 0x22d   :  { %697 = vmatmul.mubr.bf16.vlgmr.msra.gmra.mrb[4].mxu0 %v325_v45 }
 0x300   :  { %v431_v50 = vpop.f32.mrb[4].mxu0 }
 0x301   :  { %v432_v51 = vadd.f32 %v586_v49, %v431_v50  ;;  %v698_v52 = vpop.f32.mrb[5].mxu0 }
 0x302   :  { %v434_v53 = vpop.f32.mrb[6].mxu0 }
 0x303   :  { %v437_v54 = vmax.f32 %v432_v51, 0.0  ;;  %v699_v55 = vpop.f32.mrb[7].mxu0 }
 0x305   :  { %v438_v56 = vpack.c.bf16 %v437_v54, %v437_v54 }
 0x307   :  { %717 = vmatmul.mubr.bf16.vlgmr.msra.gmra.mrb[4].mxu1 %v438_v56 }
 0x3da   :  { %v544_v58 = vpop.f32.mrb[4].mxu1 }
 0x3db   :  { %v545_v59 = vadd.f32 %v595_v57, %v544_v58  ;;  %v718_v60 = vpop.f32.mrb[5].mxu1 }
 0x3dc   :  { %v547_v61 = vpop.f32.mrb[6].mxu1 }
 0x3dd   :  { %550 = vst [vmem:[#allocation11] sm:$0xff] %v545_v59  ;;  %v719_v62 = vpop.f32.mrb[7].mxu1 }
 0x3de   :  { %883 = shalt.err (!%p880_p2)
}
 0x3df   :  { %s884_s8 = scalar_lea.hbm %s1107_s9, 128 }
 0x3e0   :  { %p885_p3 = scmp.ne.s32.totalorder %s1107_s9, %s884_s8  ;;  %p888_p4 = scmp.lt.u32.totalorder %s884_s8, %s1107_s9 }
 0x3e2   :  { %p890_p5 = pnand %p888_p4, %p885_p3 }
 0x3e4   :  { %893 = shalt.err (!%p890_p5)
}
 0x3e5   :  { %560 = dma.vmem_to_hbm [thread:$0]  %s558_s12, 128, %s1107_s9, [#allocation4]  }
 0x3e6   :  { %900 = dma.done.wait [#allocation4], 128  }
 0x3e7   :  { %901 = vsyncadd [#allocation4], 4294967168 }
 0x3e8   :  { %564 = vsyncpa [#allocation3], 1 }
 0x3e9   :  { %565 = vsyncpa [#allocation6], 1 }
 0x3ea   :  { %566 = vsyncpa [#allocation9], 1 }
 0x3eb   :  { %567 = vsyncpa [#allocation4], 1 }

// kernel: tpu_custom_call.1
= control target key start
LH: loop header
LB: loop body
LE: loop exit
PB: predicated region body
PF: predicated region fallthrough
CT: control target
= control target key end

     0   :  { %14 = vsyncpa [#allocation3], 0  ;;  %s1098_s0 = inlined_call_operand.hbm [shape: bf16[8,128], index: 0, kind: input, shape index: {}]   ;;  %s1099_s1 = inlined_call_operand.hbm [shape: bf16[128,128], index: 1, kind: input, shape index: {}]   ;;  %s1100_s2 = inlined_call_operand.vmem [shape: f32[1,128], index: 2, kind: input, shape index: {}]   ;;  %s1101_s3 = inlined_call_operand.hbm [shape: bf16[128,128], index: 3, kind: input, shape index: {}]   ;;  %s1102_s4 = inlined_call_operand.vmem [shape: f32[1,128], index: 4, kind: input, shape index: {}]   ;;  %s1103_s5 = inlined_call_operand.hbm [shape: bf16[128,128], index: 5, kind: input, shape index: {}]   ;;  %s1104_s6 = inlined_call_operand.vmem [shape: f32[1,128], index: 6, kind: input, shape index: {}]   ;;  %s1105_s7 = inlined_call_operand.hbm [shape: bf16[128,128], index: 7, kind: input, shape index: {}]   ;;  %s1106_s8 = inlined_call_operand.vmem [shape: f32[1,128], index: 8, kind: input, shape index: {}]   ;;  %s1107_s9 = inlined_call_operand.hbm [shape: f32[8,128], index: 9, kind: output, shape index: {}]  }
   0x1   :  { %15 = vsyncpa [#allocation6], 0 }
   0x2   :  { %16 = vsyncpa [#allocation9], 0 }
   0x3   :  { %17 = vsyncpa [#allocation4], 0  ;;  %s902_s30 = smov [#allocation5]   ;;  %s762_s13 = scalar_lea.hbm %s1099_s1, 1024 }
   0x4   :  { %s33_s10 = sshll.u32 %s902_s30, 4  ;;  %p763_p0 = scmp.ne.s32.totalorder %s1099_s1, %s762_s13  ;;  %s34_s10 = int_to_ptr.vmem [resolvable:$true] %s33_s10 }
   0x5   :  { %p766_p1 = scmp.lt.u32.totalorder %s762_s13, %s1099_s1 }
   0x7   :  { %p768_p2 = pnand %p766_p1, %p763_p0 }
   0x9   :  { %771 = shalt.err (!%p768_p2)
}
   0xa   :  { %s772_s18 = scalar_lea.vmem %s34_s10, 1024  ;;  %p777_p4 = scmp.lt.s32.totalorder %s34_s10, %s34_s10 }
   0xb   :  { %p773_p3 = scmp.ne.s32.totalorder %s34_s10, %s772_s18  ;;  %p778_p5 = scmp.lt.s32.totalorder %s772_s18, %s772_s18 }
   0xd   :  { %p779_p6 = por %p778_p5, %p777_p4 }
   0xf   :  { %p780_p7 = pnand %p779_p6, %p773_p3 }
  0x11   :  { %783 = shalt.err (!%p780_p7)
}
  0x12   :  { %s903_s19 = smov 64   ;;  %s904_s20 = smov 4  }
  0x13   :  { %39 = dma.hbm_to_vmem [thread:$0]  %s1099_s1, 1024, %s34_s10, [#allocation6], %s903_s19, %s903_s19, %s904_s20  }
  0x14   :  { %s905_s23 = smov [#allocation8]   ;;  %s906_s25 = smov [#allocation2]  }
  0x15   :  { %s61_s24 = sshll.u32 %s905_s23, 4  ;;  %s24_s26 = sshll.u32 %s906_s25, 4  ;;  %s62_s24 = int_to_ptr.vmem [resolvable:$true] %s61_s24  ;;  %s25_s26 = int_to_ptr.vmem [resolvable:$true] %s24_s26 }
  0x16   :  { %s784_s29 = scalar_lea.hbm %s1103_s5, 1024 }
  0x17   :  { %p785_p8 = scmp.ne.s32.totalorder %s1103_s5, %s784_s29  ;;  %p788_p9 = scmp.lt.u32.totalorder %s784_s29, %s1103_s5 }
  0x19   :  { %p790_p10 = pnand %p788_p9, %p785_p8 }
  0x1b   :  { %793 = shalt.err (!%p790_p10)
}
  0x1c   :  { %s794_s1 = scalar_lea.vmem %s62_s24, 1024  ;;  %p799_p12 = scmp.lt.s32.totalorder %s62_s24, %s62_s24 }
  0x1d   :  { %p795_p11 = scmp.ne.s32.totalorder %s62_s24, %s794_s1  ;;  %p800_p13 = scmp.lt.s32.totalorder %s794_s1, %s794_s1 }
  0x1f   :  { %p801_p0 = por %p800_p13, %p799_p12 }
  0x21   :  { %p802_p1 = pnand %p801_p0, %p795_p11 }
  0x23   :  { %805 = shalt.err (!%p802_p1)
}
  0x24   :  { %67 = dma.hbm_to_vmem [thread:$0]  %s1103_s5, 1024, %s62_s24, [#allocation9], %s903_s19, %s903_s19, %s904_s20  }
  0x25   :  { %s806_s17 = scalar_lea.hbm %s1098_s0, 64 }
  0x26   :  { %p807_p2 = scmp.ne.s32.totalorder %s1098_s0, %s806_s17  ;;  %p810_p3 = scmp.lt.u32.totalorder %s806_s17, %s1098_s0 }
  0x28   :  { %p812_p4 = pnand %p810_p3, %p807_p2 }
  0x2a   :  { %815 = shalt.err (!%p812_p4)
}
  0x2b   :  { %s816_s25 = scalar_lea.vmem %s25_s26, 64  ;;  %p821_p6 = scmp.lt.s32.totalorder %s25_s26, %s25_s26 }
  0x2c   :  { %p817_p5 = scmp.ne.s32.totalorder %s25_s26, %s816_s25  ;;  %p822_p7 = scmp.lt.s32.totalorder %s816_s25, %s816_s25 }
  0x2e   :  { %p823_p8 = por %p822_p7, %p821_p6 }
  0x30   :  { %p824_p9 = pnand %p823_p8, %p817_p5 }
  0x32   :  { %827 = shalt.err (!%p824_p9)
}
  0x33   :  { %27 = dma.hbm_to_vmem [thread:$0]  %s1098_s0, 64, %s25_s26, [#allocation3]  }
  0x34   :  { %s907_s27 = smov [#allocation7]   ;;  %s908_s29 = smov [#allocation10]  }
  0x35   :  { %s47_s28 = sshll.u32 %s907_s27, 4  ;;  %s75_s30 = sshll.u32 %s908_s29, 4  ;;  %s48_s28 = int_to_ptr.vmem [resolvable:$true] %s47_s28  ;;  %s76_s30 = int_to_ptr.vmem [resolvable:$true] %s75_s30 }
  0x36   :  { %s828_s13 = scalar_lea.hbm %s1101_s3, 1024 }
  0x37   :  { %p829_p10 = scmp.ne.s32.totalorder %s1101_s3, %s828_s13  ;;  %p832_p11 = scmp.lt.u32.totalorder %s828_s13, %s1101_s3 }
  0x39   :  { %p834_p12 = pnand %p832_p11, %p829_p10 }
  0x3b   :  { %837 = shalt.err (!%p834_p12)
}
  0x3c   :  { %s838_s0 = scalar_lea.vmem %s48_s28, 1024  ;;  %p843_p0 = scmp.lt.s32.totalorder %s48_s28, %s48_s28 }
  0x3d   :  { %p839_p13 = scmp.ne.s32.totalorder %s48_s28, %s838_s0  ;;  %p844_p1 = scmp.lt.s32.totalorder %s838_s0, %s838_s0 }
  0x3f   :  { %p845_p2 = por %p844_p1, %p843_p0 }
  0x41   :  { %p846_p3 = pnand %p845_p2, %p839_p13 }
  0x43   :  { %849 = shalt.err (!%p846_p3)
}
  0x44   :  { %53 = dma.hbm_to_vmem [thread:$0]  %s1101_s3, 1024, %s48_s28, [#allocation6], %s903_s19, %s903_s19, %s904_s20  }
  0x45   :  { %s850_s21 = scalar_lea.hbm %s1105_s7, 1024 }
  0x46   :  { %p851_p4 = scmp.ne.s32.totalorder %s1105_s7, %s850_s21  ;;  %p854_p5 = scmp.lt.u32.totalorder %s850_s21, %s1105_s7 }
  0x48   :  { %p856_p6 = pnand %p854_p5, %p851_p4 }
  0x4a   :  { %859 = shalt.err (!%p856_p6)
}
  0x4b   :  { %s860_s24 = scalar_lea.vmem %s76_s30, 1024  ;;  %p865_p8 = scmp.lt.s32.totalorder %s76_s30, %s76_s30 }
  0x4c   :  { %p861_p7 = scmp.ne.s32.totalorder %s76_s30, %s860_s24  ;;  %p866_p9 = scmp.lt.s32.totalorder %s860_s24, %s860_s24 }
  0x4e   :  { %p867_p10 = por %p866_p9, %p865_p8 }
  0x50   :  { %p868_p11 = pnand %p867_p10, %p861_p7 }
  0x52   :  { %871 = shalt.err (!%p868_p11)
}
  0x53   :  { %81 = dma.hbm_to_vmem [thread:$0]  %s1105_s7, 1024, %s76_s30, [#allocation9], %s903_s19, %s903_s19, %s904_s20  }
  0x54   :  { %894 = dma.done.wait [#allocation3], 64  }
  0x55   :  { %895 = vsyncadd [#allocation3], 4294967232 }
  0x56   :  { %896 = dma.done.wait [#allocation6], 2048  }
  0x57   :  { %897 = vsyncadd [#allocation6], 4294965248 }
  0x58   :  { %898 = dma.done.wait [#allocation9], 2048  }
  0x59   :  { %899 = vsyncadd [#allocation9], 4294965248  ;;  %v909_v0 = vmov 0.0   ;;  %vm910_vm0 = vmmov 0   ;;  %v730_v1 = vld [vmem:[#allocation5] sm:$0xff]   ;;  %v731_v2 = vld [vmem:[#allocation5 + $0x8] sm:$0xff]  }
  0x5a   :  { %640 = vmatprep.subr.bf16.mxu0 %v909_v0  ;;  %656 = vmatprep.mubr.msk.bf16.mxu0 %vm910_vm0, %v909_v0  ;;  %v732_v3 = vld [vmem:[#allocation5 + $0x10] sm:$0xff]   ;;  %v738_v4 = vld [vmem:[#allocation7] sm:$0xff]   ;;  %v733_v5 = vld [vmem:[#allocation5 + $0x18] sm:$0xff]   ;;  %s911_s11 = smov [#allocation11]  }
  0x5b   :  { %660 = vmatprep.subr.bf16.mxu1 %v909_v0  ;;  %676 = vmatprep.mubr.msk.bf16.mxu1 %vm910_vm0, %v909_v0  ;;  %v739_v6 = vld [vmem:[#allocation7 + $0x8] sm:$0xff]   ;;  %v734_v7 = vld [vmem:[#allocation5 + $0x20] sm:$0xff]   ;;  %v740_v8 = vld [vmem:[#allocation7 + $0x10] sm:$0xff]   ;;  %s557_s12 = sshll.u32 %s911_s11, 4  ;;  %s558_s12 = int_to_ptr.vmem [resolvable:$true] %s557_s12 }
  0x5c   :  { %641 = vmatpush3.bf16.msra.mxu0 %v730_v1  ;;  %661 = vmatpush3.bf16.msra.mxu1 %v738_v4  ;;  %v735_v9 = vld [vmem:[#allocation5 + $0x28] sm:$0xff]   ;;  %v741_v10 = vld [vmem:[#allocation7 + $0x18] sm:$0xff]   ;;  %v736_v11 = vld [vmem:[#allocation5 + $0x30] sm:$0xff]   ;;  %p877_p13 = scmp.lt.s32.totalorder %s558_s12, %s558_s12 }
  0x5d   :  { %642 = vmatprep.subr.bf16.mxu0 %v909_v0  ;;  %662 = vmatprep.subr.bf16.mxu1 %v909_v0  ;;  %v742_v12 = vld [vmem:[#allocation7 + $0x20] sm:$0xff]   ;;  %v737_v13 = vld [vmem:[#allocation5 + $0x38] sm:$0xff]   ;;  %v743_v14 = vld [vmem:[#allocation7 + $0x28] sm:$0xff]  }
  0x5e   :  { %v100_v15 = vld [vmem:[#allocation2] sm:$0xf]  ;;  %v744_v16 = vld [vmem:[#allocation7 + $0x30] sm:$0xff]   ;;  %v746_v18 = vld [vmem:[#allocation8] sm:$0xff]  }
  0x5f   :  { %v745_v17 = vld [vmem:[#allocation7 + $0x38] sm:$0xff]   ;;  %v747_v19 = vld [vmem:[#allocation8 + $0x8] sm:$0xff]   ;;  %v748_v20 = vld [vmem:[#allocation8 + $0x10] sm:$0xff]  }
  0x60   :  { %643 = vmatpush3.bf16.msra.mxu0 %v731_v2  ;;  %663 = vmatpush3.bf16.msra.mxu1 %v739_v6  ;;  %v749_v21 = vld [vmem:[#allocation8 + $0x18] sm:$0xff]   ;;  %v750_v22 = vld [vmem:[#allocation8 + $0x20] sm:$0xff]   ;;  %v751_v23 = vld [vmem:[#allocation8 + $0x28] sm:$0xff]  }
  0x61   :  { %644 = vmatprep.subr.bf16.mxu0 %v909_v0  ;;  %664 = vmatprep.subr.bf16.mxu1 %v909_v0  ;;  %v752_v24 = vld [vmem:[#allocation8 + $0x30] sm:$0xff]   ;;  %v568_v25 = vld [vmem:[%s1100_s2] ss:$0 sm:$0xff]  ;;  %v754_v34 = vld [vmem:[#allocation10] sm:$0xff]  }
  0x62   :  { %v753_v33 = vld [vmem:[#allocation8 + $0x38] sm:$0xff]   ;;  %v755_v35 = vld [vmem:[#allocation10 + $0x8] sm:$0xff]   ;;  %v756_v36 = vld [vmem:[#allocation10 + $0x10] sm:$0xff]  }
  0x63   :  { %v757_v37 = vld [vmem:[#allocation10 + $0x18] sm:$0xff]   ;;  %v758_v38 = vld [vmem:[#allocation10 + $0x20] sm:$0xff]   ;;  %v759_v39 = vld [vmem:[#allocation10 + $0x28] sm:$0xff]  }
  0x64   :  { %645 = vmatpush3.bf16.msra.mxu0 %v732_v3  ;;  %665 = vmatpush3.bf16.msra.mxu1 %v740_v8  ;;  %v577_v40 = vld [vmem:[%s1102_s4] ss:$0 sm:$0xff]  ;;  %v760_v47 = vld [vmem:[#allocation10 + $0x30] sm:$0xff]  }
  0x65   :  { %646 = vmatprep.subr.bf16.mxu0 %v909_v0  ;;  %666 = vmatprep.subr.bf16.mxu1 %v909_v0  ;;  %v761_v48 = vld [vmem:[#allocation10 + $0x38] sm:$0xff]  }
  0x66   :  { %v586_v49 = vld [vmem:[%s1104_s6] ss:$0 sm:$0xff]  ;;  %s872_s6 = scalar_lea.vmem %s558_s12, 128 }
  0x67   :  { %v595_v57 = vld [vmem:[%s1106_s8] ss:$0 sm:$0xff]  ;;  %p873_p12 = scmp.ne.s32.totalorder %s558_s12, %s872_s6  ;;  %p878_p0 = scmp.lt.s32.totalorder %s872_s6, %s872_s6 }
  0x68   :  { %647 = vmatpush3.bf16.msra.mxu0 %v733_v5  ;;  %667 = vmatpush3.bf16.msra.mxu1 %v741_v10 }
  0x69   :  { %648 = vmatprep.subr.bf16.mxu0 %v909_v0  ;;  %668 = vmatprep.subr.bf16.mxu1 %v909_v0  ;;  %p879_p1 = por %p878_p0, %p877_p13 }
  0x6b   :  { %p880_p2 = pnand %p879_p1, %p873_p12 }
  0x6c   :  { %649 = vmatpush3.bf16.msra.mxu0 %v734_v7  ;;  %669 = vmatpush3.bf16.msra.mxu1 %v742_v12 }
  0x6d   :  { %650 = vmatprep.subr.bf16.mxu0 %v909_v0  ;;  %670 = vmatprep.subr.bf16.mxu1 %v909_v0 }
  0x70   :  { %651 = vmatpush3.bf16.msra.mxu0 %v735_v9  ;;  %671 = vmatpush3.bf16.msra.mxu1 %v743_v14 }
  0x71   :  { %652 = vmatprep.subr.bf16.mxu0 %v909_v0  ;;  %672 = vmatprep.subr.bf16.mxu1 %v909_v0 }
  0x74   :  { %653 = vmatpush3.bf16.msra.mxu0 %v736_v11  ;;  %673 = vmatpush3.bf16.msra.mxu1 %v744_v16 }
  0x75   :  { %654 = vmatprep.subr.bf16.mxu0 %v909_v0  ;;  %674 = vmatprep.subr.bf16.mxu1 %v909_v0 }
  0x78   :  { %655 = vmatpush3.bf16.msra.mxu0 %v737_v13  ;;  %675 = vmatpush3.bf16.msra.mxu1 %v745_v17 }
  0x79   :  { %680 = vmatprep.subr.bf16.mxu0 %v909_v0  ;;  %700 = vmatprep.subr.bf16.mxu1 %v909_v0 }
  0x7b   :  { %657 = vmatmul.mubr.bf16.vlgmr.msra.gmra.mrb[0].mxu0 %v100_v15 }
  0x7c   :  { %696 = vmatprep.mubr.msk.bf16.mxu0 %vm910_vm0, %v909_v0  ;;  %681 = vmatpush3.bf16.msra.mxu0 %v746_v18 }
  0x7d   :  { %682 = vmatprep.subr.bf16.mxu0 %v909_v0 }
  0x80   :  { %683 = vmatpush3.bf16.msra.mxu0 %v747_v19 }
  0x81   :  { %684 = vmatprep.subr.bf16.mxu0 %v909_v0 }
  0x84   :  { %685 = vmatpush3.bf16.msra.mxu0 %v748_v20 }
  0x85   :  { %686 = vmatprep.subr.bf16.mxu0 %v909_v0 }
  0x88   :  { %687 = vmatpush3.bf16.msra.mxu0 %v749_v21 }
  0x89   :  { %688 = vmatprep.subr.bf16.mxu0 %v909_v0 }
  0x8c   :  { %689 = vmatpush3.bf16.msra.mxu0 %v750_v22 }
  0x8d   :  { %690 = vmatprep.subr.bf16.mxu0 %v909_v0 }
  0x90   :  { %691 = vmatpush3.bf16.msra.mxu0 %v751_v23 }
  0x91   :  { %692 = vmatprep.subr.bf16.mxu0 %v909_v0 }
  0x94   :  { %693 = vmatpush3.bf16.msra.mxu0 %v752_v24 }
  0x95   :  { %694 = vmatprep.subr.bf16.mxu0 %v909_v0 }
  0x98   :  { %695 = vmatpush3.bf16.msra.mxu0 %v753_v33 }
 0x14e   :  { %v206_v26 = vpop.f32.mrb[0].mxu0 }
 0x14f   :  { %v207_v27 = vadd.f32 %v568_v25, %v206_v26  ;;  %v658_v28 = vpop.f32.mrb[1].mxu0 }
 0x150   :  { %v209_v29 = vpop.f32.mrb[2].mxu0 }
 0x151   :  { %v212_v30 = vmax.f32 %v207_v27, 0.0  ;;  %v659_v31 = vpop.f32.mrb[3].mxu0 }
 0x153   :  { %v213_v32 = vpack.c.bf16 %v212_v30, %v212_v30 }
 0x155   :  { %677 = vmatmul.mubr.bf16.vlgmr.msra.gmra.mrb[0].mxu1 %v213_v32 }
 0x156   :  { %716 = vmatprep.mubr.msk.bf16.mxu1 %vm910_vm0, %v909_v0  ;;  %701 = vmatpush3.bf16.msra.mxu1 %v754_v34 }
 0x157   :  { %702 = vmatprep.subr.bf16.mxu1 %v909_v0 }
 0x15a   :  { %703 = vmatpush3.bf16.msra.mxu1 %v755_v35 }
 0x15b   :  { %704 = vmatprep.subr.bf16.mxu1 %v909_v0 }
 0x15e   :  { %705 = vmatpush3.bf16.msra.mxu1 %v756_v36 }
 0x15f   :  { %706 = vmatprep.subr.bf16.mxu1 %v909_v0 }
 0x162   :  { %707 = vmatpush3.bf16.msra.mxu1 %v757_v37 }
 0x163   :  { %708 = vmatprep.subr.bf16.mxu1 %v909_v0 }
 0x166   :  { %709 = vmatpush3.bf16.msra.mxu1 %v758_v38 }
 0x167   :  { %710 = vmatprep.subr.bf16.mxu1 %v909_v0 }
 0x16a   :  { %711 = vmatpush3.bf16.msra.mxu1 %v759_v39 }
 0x16b   :  { %712 = vmatprep.subr.bf16.mxu1 %v909_v0 }
 0x16e   :  { %713 = vmatpush3.bf16.msra.mxu1 %v760_v47 }
 0x16f   :  { %714 = vmatprep.subr.bf16.mxu1 %v909_v0 }
 0x172   :  { %715 = vmatpush3.bf16.msra.mxu1 %v761_v48 }
 0x228   :  { %v319_v41 = vpop.f32.mrb[0].mxu1 }
 0x229   :  { %v320_v42 = vadd.f32 %v577_v40, %v319_v41  ;;  %v678_v43 = vpop.f32.mrb[1].mxu1 }
 0x22a   :  { %v322_v44 = vpop.f32.mrb[2].mxu1 }
 0x22b   :  { %v325_v45 = vpack.c.bf16 %v320_v42, %v320_v42  ;;  %v679_v46 = vpop.f32.mrb[3].mxu1 }
 0x22d   :  { %697 = vmatmul.mubr.bf16.vlgmr.msra.gmra.mrb[4].mxu0 %v325_v45 }
 0x300   :  { %v431_v50 = vpop.f32.mrb[4].mxu0 }
 0x301   :  { %v432_v51 = vadd.f32 %v586_v49, %v431_v50  ;;  %v698_v52 = vpop.f32.mrb[5].mxu0 }
 0x302   :  { %v434_v53 = vpop.f32.mrb[6].mxu0 }
 0x303   :  { %v437_v54 = vmax.f32 %v432_v51, 0.0  ;;  %v699_v55 = vpop.f32.mrb[7].mxu0 }
 0x305   :  { %v438_v56 = vpack.c.bf16 %v437_v54, %v437_v54 }
 0x307   :  { %717 = vmatmul.mubr.bf16.vlgmr.msra.gmra.mrb[4].mxu1 %v438_v56 }
 0x3da   :  { %v544_v58 = vpop.f32.mrb[4].mxu1 }
 0x3db   :  { %v545_v59 = vadd.f32 %v595_v57, %v544_v58  ;;  %v718_v60 = vpop.f32.mrb[5].mxu1 }
 0x3dc   :  { %v547_v61 = vpop.f32.mrb[6].mxu1 }
 0x3dd   :  { %550 = vst [vmem:[#allocation11] sm:$0xff] %v545_v59  ;;  %v719_v62 = vpop.f32.mrb[7].mxu1 }
 0x3de   :  { %883 = shalt.err (!%p880_p2)
}
 0x3df   :  { %s884_s8 = scalar_lea.hbm %s1107_s9, 128 }
 0x3e0   :  { %p885_p3 = scmp.ne.s32.totalorder %s1107_s9, %s884_s8  ;;  %p888_p4 = scmp.lt.u32.totalorder %s884_s8, %s1107_s9 }
 0x3e2   :  { %p890_p5 = pnand %p888_p4, %p885_p3 }
 0x3e4   :  { %893 = shalt.err (!%p890_p5)
}
 0x3e5   :  { %560 = dma.vmem_to_hbm [thread:$0]  %s558_s12, 128, %s1107_s9, [#allocation4]  }
 0x3e6   :  { %900 = dma.done.wait [#allocation4], 128  }
 0x3e7   :  { %901 = vsyncadd [#allocation4], 4294967168 }
 0x3e8   :  { %564 = vsyncpa [#allocation3], 1 }
 0x3e9   :  { %565 = vsyncpa [#allocation6], 1 }
 0x3ea   :  { %566 = vsyncpa [#allocation9], 1 }
 0x3eb   :  { %567 = vsyncpa [#allocation4], 1 }

</bundles_post_ra>
